<compile_context>
chip_gen: v7x
topology: tpu7x:2x2x1
jax: 0.10.0
libtpu: 0.0.40
codegen_flags: <defaults>
</compile_context>

<pallas_src>
import functools

import jax
import jax.numpy as jnp
from jax import lax
from jax.experimental import pallas as pl
from jax.experimental.pallas import tpu as pltpu


def _cdiv(a, b):
    return -(-a // b)


def _round_up(a, b):
    return _cdiv(a, b) * b


def _rgn_kernel(x_ref, gamma_ref, beta_ref, o_ref, *, eps, inv_n, inv_nm1):
    # x_ref block: (bt, gt, R, L); gamma/beta block: (1, gt, R, 1).
    # Pass 1 (single VMEM read): per-(sample, group) sum and sum-of-squares.
    x = x_ref[...].astype(jnp.float32)
    lane_sum = jnp.sum(x, axis=3, keepdims=True)               # XLU lane reduce
    lane_ssq = jnp.sum(x * x, axis=3, keepdims=True)
    s = jnp.sum(lane_sum, axis=2, keepdims=True)               # (bt, gt, 1, 1)
    ss = jnp.sum(lane_ssq, axis=2, keepdims=True)

    mean = s * inv_n
    # Unbiased variance (matches torch.var): var = (ss - n*mean^2) / (n - 1).
    # Clamp at 0 to guard against cancellation for large-mean data; bit-exact
    # two-pass variance would need a third VMEM read pass.
    var = jnp.maximum(ss - s * mean, 0.0) * inv_nm1
    inv_std = lax.rsqrt(var + eps)

    # Pass 2: normalize + affine folded into one multiply-add per element:
    #   y = (x - mean) * inv_std * gamma + beta = x * scale + shift
    gamma = gamma_ref[...].astype(jnp.float32)                  # (1, gt, R, 1)
    beta = beta_ref[...].astype(jnp.float32)
    scale = inv_std * gamma                                     # (bt, gt, R, 1)
    shift = beta - mean * scale
    y = x_ref[...].astype(jnp.float32) * scale + shift
    o_ref[...] = y.astype(o_ref.dtype)


def _vmem_limit_bytes():
    try:
        cap = int(pltpu.get_tpu_info().vmem_capacity_bytes)
    except Exception:
        cap = 64 * 1024 * 1024
    # ~3/4 of physical capacity: ≈96 MiB on 128 MiB parts (v5e/v6e),
    # ≈48 MiB on 64 MiB parts (v7x). Always derived from the device, so a
    # v6e-sized tile can never be silently carried to v7x.
    return (cap // 4) * 3


def _pick_spatial_split(cpg, hw):
    """Choose hs so each group is viewed as (cpg*hs, hw//hs).

    Priorities: keep the lane axis a multiple of 128 (unmasked vst), then
    minimize (8,128)-padded VMEM footprint (fills sublanes when cpg < 8).
    """
    best_hs, best_cost = 1, None
    for hs in range(1, hw + 1):
        if hw % hs:
            continue
        lanes = hw // hs
        if lanes % 128 != 0:
            continue
        cost = _round_up(cpg * hs, 8) * lanes  # padded per-group elements
        if best_cost is None or cost < best_cost:
            best_hs, best_cost = hs, cost
    # TODO(synk): when H*W has no 128-multiple factorization (e.g. 14x14),
    # also fold factors of cpg into the lane axis to avoid masked stores.
    return best_hs


def renorm_group_norm(x, gamma, beta, *, num_groups, eps=1e-5):
    """Pallas implementation of RenormGroupNorm.forward (scale == 0 path).

    Args:
      x:      (B, C, H, W)
      gamma:  (1, C, 1, 1)
      beta:   (1, C, 1, 1)
    Returns:
      (B, C, H, W), same dtype as x.
    """
    B, C, H, W = x.shape
    if num_groups == 0:
        # Module's num_groups == 0 branch: pure per-channel affine (trivially
        # elementwise, left to XLA).
        return (x * gamma + beta).astype(x.dtype)

    assert C % num_groups == 0
    G = num_groups
    cpg = C // G
    HW = H * W
    n = cpg * HW
    assert n > 1, "unbiased variance (torch.var) needs >= 2 elements per group"

    itemsize = x.dtype.itemsize

    # --- sublane/lane repack (metadata-only reshape of a contiguous group) ---
    hs = _pick_spatial_split(cpg, HW)
    R = cpg * hs          # sublane axis: channels-per-group * spatial split
    L = HW // hs          # lane axis: multiple of 128 when possible

    x4 = x.reshape(B, G, R, L)
    g4 = jnp.repeat(gamma.reshape(1, G, cpg, 1), hs, axis=2)   # (1, G, R, 1)
    b4 = jnp.repeat(beta.reshape(1, G, cpg, 1), hs, axis=2)

    # --- VMEM budgeting (dtype-aware, padded footprint) ---
    vmem_limit = _vmem_limit_bytes()
    block_budget = max(vmem_limit // 5, 1)   # 2x-buf in + 2x-buf out + headroom

    per_group_bytes = _round_up(R, 8) * _round_up(L, 128) * itemsize
    if per_group_bytes > block_budget:
        if 4 * per_group_bytes > vmem_limit:
            raise ValueError(
                f"single-group block needs {per_group_bytes} bytes "
                f"(x4 double-buffered) but VMEM budget is {vmem_limit} bytes; "
                "spatial chunking is not implemented")
        # TODO(synk): add an inner pltpu.emit_pipeline over spatial chunks with
        # sum/sumsq accumulators instead of leaning on the remaining headroom.

    # Fuse as many whole groups as fit (prefer the full channel axis so each
    # per-sample DMA is one contiguous slab and gamma/beta are loaded once).
    gt = 1
    for cand in range(1, G + 1):
        if G % cand == 0 and cand * per_group_bytes <= block_budget:
            gt = cand
    per_sample_bytes = gt * per_group_bytes

    # Batch tile: as many samples as fit the block budget (cdiv tiling, so no
    # "bt divides B" restriction and awkward B does not collapse to bt=1).
    bt = int(max(1, min(B, block_budget // per_sample_bytes)))

    # v7x: prefer an even number (>=2) of parallel grid steps so both
    # TensorCores stay busy; never shrink the block by more than 2x for this.
    n_g_tiles = G // gt
    if (n_g_tiles * _cdiv(B, bt)) % 2 == 1 and B > 1:
        for cand in range(bt, max(bt // 2, 1) - 1, -1):
            if (n_g_tiles * _cdiv(B, cand)) % 2 == 0:
                bt = cand
                break

    grid = (n_g_tiles, _cdiv(B, bt))   # group tiles outer -> gamma/beta block
                                       # index is constant on inner batch steps
    x_block = (bt, gt, R, L)
    x_index_map = lambda g, b: (b, g, 0, 0)

    # Fallback only: deeper buffering when blocks are forced tiny and the grid
    # is long; otherwise VMEM is better spent on larger blocks.
    if bt * per_sample_bytes < 512 * 1024 and grid[0] * grid[1] >= 8:
        x_in_spec = pl.BlockSpec(x_block, x_index_map,
                                 pipeline_mode=pl.Buffered(3))
    else:
        x_in_spec = pl.BlockSpec(x_block, x_index_map)

    kernel = functools.partial(
        _rgn_kernel, eps=float(eps), inv_n=1.0 / n, inv_nm1=1.0 / (n - 1))

    out4 = pl.pallas_call(
        kernel,
        out_shape=jax.ShapeDtypeStruct((B, G, R, L), x.dtype),
        grid_spec=pltpu.PrefetchScalarGridSpec(
            num_scalar_prefetch=0,
            grid=grid,
            in_specs=[
                x_in_spec,
                pl.BlockSpec((1, gt, R, 1), lambda g, b: (0, g, 0, 0)),
                pl.BlockSpec((1, gt, R, 1), lambda g, b: (0, g, 0, 0)),
            ],
            out_specs=pl.BlockSpec(x_block, x_index_map),
        ),
        compiler_params=pltpu.CompilerParams(
            dimension_semantics=("parallel", "parallel"),
            vmem_limit_bytes=vmem_limit,
        ),
    )(x4, g4, b4)

    return out4.reshape(B, C, H, W)


def _reference(x, gamma, beta, *, num_groups, eps=1e-5):
    """Pure-JAX reference mirroring the PyTorch forward (unbiased var)."""
    B, C, H, W = x.shape
    cpg = C // num_groups
    xg = x.reshape(B, num_groups, cpg, H, W).astype(jnp.float32)
    mean = jnp.mean(xg, axis=(2, 3, 4), keepdims=True)
    var = jnp.sum((xg - mean) ** 2, axis=(2, 3, 4), keepdims=True) / (
        cpg * H * W - 1)
    y = (xg - mean) / jnp.sqrt(var + eps)
    y = y.reshape(B, C, H, W)
    return (y * gamma + beta).astype(x.dtype)


if __name__ == "__main__":
    # Small shapes consistent with the module: B=2, C=4, H=W=16, groups=2.
    num_groups = 2
    num_channels = 4
    B, H, W = 2, 16, 16

    key = jax.random.PRNGKey(0)
    kx, kg, kb = jax.random.split(key, 3)
    x = jax.random.normal(kx, (B, num_channels, H, W), dtype=jnp.float32)
    # Non-trivial (but deterministic) affine parameters to exercise the
    # per-channel gamma/beta path; the module initializes them to 1 / 0.
    gamma = 1.0 + 0.1 * jax.random.normal(kg, (1, num_channels, 1, 1),
                                          dtype=jnp.float32)
    beta = 0.1 * jax.random.normal(kb, (1, num_channels, 1, 1),
                                   dtype=jnp.float32)

    out = renorm_group_norm(x, gamma, beta, num_groups=num_groups, eps=1e-5)
    out = jax.block_until_ready(out)

    ref = _reference(x, gamma, beta, num_groups=num_groups, eps=1e-5)
    assert out.shape == (B, num_channels, H, W)
    assert jnp.allclose(out, ref, atol=1e-4, rtol=1e-4)

    print("KERNEL_OK")
</pallas_src>

<mosaic_0001>
module attributes {stable_mosaic.version = 11 : i64} {
  func.func @_rgn_kernel(%arg0: i32, %arg1: i32, %arg2: memref<1x2x4x128xf32, #tpu.memory_space<vmem>>, %arg3: memref<1x2x4x1xf32, #tpu.memory_space<vmem>>, %arg4: memref<1x2x4x1xf32, #tpu.memory_space<vmem>>, %arg5: memref<1x2x4x128xf32, #tpu.memory_space<vmem>>) attributes {dimension_semantics = [#tpu.dimension_semantics<parallel>, #tpu.dimension_semantics<parallel>], iteration_bounds = array<i64: 1, 2>, scalar_prefetch = 0 : i64, scratch_operands = 0 : i64, tpu.core_type = #tpu.core_type<tc>, window_params = [{transform_indices = @transform_0, window_bounds = array<i64: 1, 2, 4, 128>}, {transform_indices = @transform_1, window_bounds = array<i64: 1, 2, 4, 1>}, {transform_indices = @transform_2, window_bounds = array<i64: 1, 2, 4, 1>}, {transform_indices = @transform_3, window_bounds = array<i64: 1, 2, 4, 128>}]} {
    %c0 = arith.constant 0 : index
    %c0_0 = arith.constant 0 : index
    %c0_1 = arith.constant 0 : index
    %c0_2 = arith.constant 0 : index
    %0 = vector.load %arg2[%c0, %c0_0, %c0_1, %c0_2] : memref<1x2x4x128xf32, #tpu.memory_space<vmem>>, vector<1x2x4x128xf32>
    %cst = arith.constant dense<0.000000e+00> : vector<1x2x4xf32>
    %1 = vector.multi_reduction <add>, %0, %cst [3] : vector<1x2x4x128xf32> to vector<1x2x4xf32>
    %2 = vector.shape_cast %1 : vector<1x2x4xf32> to vector<1x2x4x1xf32>
    %3 = arith.mulf %0, %0 : vector<1x2x4x128xf32>
    %cst_3 = arith.constant dense<0.000000e+00> : vector<1x2x4xf32>
    %4 = vector.multi_reduction <add>, %3, %cst_3 [3] : vector<1x2x4x128xf32> to vector<1x2x4xf32>
    %5 = vector.shape_cast %4 : vector<1x2x4xf32> to vector<1x2x4x1xf32>
    %cst_4 = arith.constant dense<0.000000e+00> : vector<1x2x1xf32>
    %6 = vector.multi_reduction <add>, %2, %cst_4 [2] : vector<1x2x4x1xf32> to vector<1x2x1xf32>
    %7 = vector.shape_cast %6 : vector<1x2x1xf32> to vector<1x2x1x1xf32>
    %cst_5 = arith.constant dense<0.000000e+00> : vector<1x2x1xf32>
    %8 = vector.multi_reduction <add>, %5, %cst_5 [2] : vector<1x2x4x1xf32> to vector<1x2x1xf32>
    %9 = vector.shape_cast %8 : vector<1x2x1xf32> to vector<1x2x1x1xf32>
    %cst_6 = arith.constant 0.001953125 : f32
    %10 = vector.broadcast %cst_6 : f32 to vector<1x2x1x1xf32>
    %11 = arith.mulf %7, %10 : vector<1x2x1x1xf32>
    %12 = arith.mulf %7, %11 : vector<1x2x1x1xf32>
    %13 = arith.subf %9, %12 : vector<1x2x1x1xf32>
    %cst_7 = arith.constant 0.000000e+00 : f32
    %14 = vector.broadcast %cst_7 : f32 to vector<1x2x1x1xf32>
    %15 = arith.maximumf %13, %14 : vector<1x2x1x1xf32>
    %cst_8 = arith.constant 0.00195694715 : f32
    %16 = vector.broadcast %cst_8 : f32 to vector<1x2x1x1xf32>
    %17 = arith.mulf %15, %16 : vector<1x2x1x1xf32>
    %cst_9 = arith.constant 9.99999974E-6 : f32
    %18 = vector.broadcast %cst_9 : f32 to vector<1x2x1x1xf32>
    %19 = arith.addf %17, %18 : vector<1x2x1x1xf32>
    %20 = math.rsqrt %19 : vector<1x2x1x1xf32>
    %c0_10 = arith.constant 0 : index
    %c0_11 = arith.constant 0 : index
    %c0_12 = arith.constant 0 : index
    %c0_13 = arith.constant 0 : index
    %21 = vector.load %arg3[%c0_10, %c0_11, %c0_12, %c0_13] : memref<1x2x4x1xf32, #tpu.memory_space<vmem>>, vector<1x2x4x1xf32>
    %c0_14 = arith.constant 0 : index
    %c0_15 = arith.constant 0 : index
    %c0_16 = arith.constant 0 : index
    %c0_17 = arith.constant 0 : index
    %22 = vector.load %arg4[%c0_14, %c0_15, %c0_16, %c0_17] : memref<1x2x4x1xf32, #tpu.memory_space<vmem>>, vector<1x2x4x1xf32>
    %23 = vector.broadcast %20 : vector<1x2x1x1xf32> to vector<1x2x4x1xf32>
    %24 = arith.mulf %23, %21 : vector<1x2x4x1xf32>
    %25 = vector.broadcast %11 : vector<1x2x1x1xf32> to vector<1x2x4x1xf32>
    %26 = arith.mulf %25, %24 : vector<1x2x4x1xf32>
    %27 = arith.subf %22, %26 : vector<1x2x4x1xf32>
    %c0_18 = arith.constant 0 : index
    %c0_19 = arith.constant 0 : index
    %c0_20 = arith.constant 0 : index
    %c0_21 = arith.constant 0 : index
    %28 = vector.load %arg2[%c0_18, %c0_19, %c0_20, %c0_21] : memref<1x2x4x128xf32, #tpu.memory_space<vmem>>, vector<1x2x4x128xf32>
    %29 = vector.broadcast %24 : vector<1x2x4x1xf32> to vector<1x2x4x128xf32>
    %30 = arith.mulf %28, %29 : vector<1x2x4x128xf32>
    %31 = vector.broadcast %27 : vector<1x2x4x1xf32> to vector<1x2x4x128xf32>
    %32 = arith.addf %30, %31 : vector<1x2x4x128xf32>
    %c0_22 = arith.constant 0 : index
    %c0_23 = arith.constant 0 : index
    %c0_24 = arith.constant 0 : index
    %c0_25 = arith.constant 0 : index
    %33 = vector.load %arg5[%c0_22, %c0_23, %c0_24, %c0_25] : memref<1x2x4x128xf32, #tpu.memory_space<vmem>>, vector<1x2x4x128xf32>
    tpu.vector_store %arg5[%c0_22, %c0_23, %c0_24, %c0_25], %32 {strides = array<i32>} : memref<1x2x4x128xf32, #tpu.memory_space<vmem>>, vector<1x2x4x128xf32>,
    return
  }
  func.func @transform_0(%arg0: i32, %arg1: i32) -> (i32, i32, i32, i32) {
    %c0_i32 = arith.constant 0 : i32
    %c0_i32_0 = arith.constant 0 : i32
    %c0_i32_1 = arith.constant 0 : i32
    return %arg1, %arg0, %c0_i32, %c0_i32_0 : i32, i32, i32, i32
  }
  func.func @transform_1(%arg0: i32, %arg1: i32) -> (i32, i32, i32, i32) {
    %c0_i32 = arith.constant 0 : i32
    %c0_i32_0 = arith.constant 0 : i32
    %c0_i32_1 = arith.constant 0 : i32
    %c0_i32_2 = arith.constant 0 : i32
    return %c0_i32, %arg0, %c0_i32_0, %c0_i32_1 : i32, i32, i32, i32
  }
  func.func @transform_2(%arg0: i32, %arg1: i32) -> (i32, i32, i32, i32) {
    %c0_i32 = arith.constant 0 : i32
    %c0_i32_0 = arith.constant 0 : i32
    %c0_i32_1 = arith.constant 0 : i32
    %c0_i32_2 = arith.constant 0 : i32
    return %c0_i32, %arg0, %c0_i32_0, %c0_i32_1 : i32, i32, i32, i32
  }
  func.func @transform_3(%arg0: i32, %arg1: i32) -> (i32, i32, i32, i32) {
    %c0_i32 = arith.constant 0 : i32
    %c0_i32_0 = arith.constant 0 : i32
    %c0_i32_1 = arith.constant 0 : i32
    return %arg1, %arg0, %c0_i32, %c0_i32_0 : i32, i32, i32, i32
  }
}

</mosaic_0001>

<bundles_post_ra>
// kernel: tpu_custom_call.1
= control target key start
LH: loop header
LB: loop body
LE: loop exit
PB: predicated region body
PF: predicated region fallthrough
CT: control target
= control target key end

     0   :  { %8 = vsyncpa [#allocation3], 0  ;;  %s796_s0 = inlined_call_operand.vmem [shape: f32[2,2,4,128], index: 0, kind: input, shape index: {}]   ;;  %s797_s1 = inlined_call_operand.vmem [shape: f32[1,2,4,1], index: 1, kind: input, shape index: {}]   ;;  %s798_s2 = inlined_call_operand.vmem [shape: f32[1,2,4,1], index: 2, kind: input, shape index: {}]   ;;  %s799_s3 = inlined_call_operand.hbm [shape: f32[2,2,4,128], index: 3, kind: output, shape index: {}]  }
   0x1   :  { %10 = vsyncpa [#allocation3 + $0x1], 0  ;;  %s649_s12 = smov 0   ;;  %s651_s13 = smov 0  }
   0x2   :  { %s653_s14 = smov 0   ;;  %s655_s15 = smov 0  }
   0x3   :  { %s657_s16 = smov 0   ;;  %s659_s17 = smov 0  }
   0x4 LB: > { %s464_s18 = sadd.s32 4294967295, %s623_s17   ;;  %s465_s19 = sadd.s32 4294967294, %s623_s17   ;;  %s623_s17 = sphi %s659_s17, %s16_s17   ;;  %s619_s16 = sphi %s657_s16, %s806_s16   ;;  %s615_s15 = sphi %s655_s15, %s805_s15   ;;  %s611_s14 = sphi %s653_s14, %s804_s14   ;;  %s607_s13 = sphi %s651_s13, %s803_s13   ;;  %s603_s12 = sphi %s649_s12, %s802_s12  }
   0x5   : > { %s25_s20 = sadd.s32 1, %s619_s16  ;;  %s117_s21 = sadd.s32 1, %s611_s14 }
   0x6   : > { %p26_p0 = scmp.ge.s32.totalorder %s25_s20, 2  ;;  %p127_p1 = scmp.ne.s32.totalorder %s611_s14, %s607_s13 }
   0x7   : > { %p128_p2 = scmp.eq.s32.totalorder %s464_s18, 1  ;;  %p133_p3 = scmp.ne.s32.totalorder %s607_s13, %s603_s12 }
   0x8   : > { %s808_s20 = smov (%p26_p0, %s25_s20), 0  ;;  %p134_p5 = scmp.eq.s32.totalorder %s465_s19, 1 }
   0x9   : > { %p689_p4 = por %p128_p2, %p127_p1  ;;  %s112_s23 = ssub.s32 %s619_s16, %s808_s20 }
   0xa   : > { %p470_p6 = scmp.ge.s32.totalorder %s623_s17, 1  ;;  %p115_p7 = scmp.eq.s32.totalorder %s112_s23, 0 }
   0xb   : > { %p696_p8 = por %p134_p5, %p133_p3  ;;  %p183_p9 = scmp.lt.s32.totalorder %s623_s17, 3 }
   0xc   : > { %s702_s25 = scalar_select %p115_p7, %s611_s14, %s117_s21  }
   0xd   : > { %p184_p10 = pnand %p470_p6, %p183_p9 }
   0xe   : > { %p222_p11 = scmp.lt.s32.totalorder (!%p184_p10), %s615_s15, 1  ;;  %vm246_vm0 = vcmask (!%p184_p10), 1043456   ;;  %v625_v8 = vmov (!%p184_p10), 0   ;;  %v303_v53 = vld [vmem:[%s797_s1] sm:$0xf] (!%p184_p10)  ;;  %s218_s18 = sand.u32 (!%p184_p10), 1, %s607_s13  }
   0xf   : > { %187 = sbr.rel (%p184_p10) target bundleno = 365 (0x16d), region = 32  ;;  %539 = vset.pattern.permute.xlu0 (!%p184_p10), %v625_v8  ;;  %540 = vset.pattern.permute.xlu1 (!%p184_p10), %v625_v8  ;;  %v304_v56 = vld [vmem:[%s797_s1 + $0x4] sm:$0xf] (!%p184_p10)  ;;  %v305_v60 = vld [vmem:[%s798_s2] sm:$0xf] (!%p184_p10)  ;;  %s471_s19 = sshll.u32 (!%p184_p10), %s218_s18, 3 }
  0x10   : > { %v306_v63 = vld [vmem:[%s798_s2 + $0x4] sm:$0xf] (!%p184_p10)  ;;  %s220_s21 = scalar_lea.vmem (!%p184_p10), [#allocation2], %s471_s19 }
  0x11   : > { %s355_s23 = sshll.u32 (!%p184_p10), %s220_s21, 4  ;;  %s743_s23 = int_to_ptr.vmem [resolvable:$true] %s355_s23 }
  0x12   : > { %s545_s4 = scalar_lea.vmem (!%p184_p10), %s743_s23, 128 }
  0x13   : > { %p546_p12 = scmp.ne.s32.totalorder (!%p184_p10), %s743_s23, %s545_s4 }
  0x15   : > { %p547_p13 = pnand (!%p184_p10), %p546_p12, %p689_p4 }
  0x16   : > { %s223_s26 = scalar_select %p222_p11, %s615_s15, 1 }
  0x17   : > { %p548_p0 = pneg %p547_p13 }
  0x18   : > { %s479_s27 = sshll.u32 %s223_s26, 3  ;;  %s480_s26 = sshll.u32 %s615_s15, 7 }
  0x19   : > { %s229_s30 = scalar_lea.vmem %s796_s0, %s479_s27  ;;  %s748_s29 = scalar_lea.hbm %s799_s3, %s480_s26 }
  0x1a   : > { %v709_v0 = vld [vmem:[%s229_s30] sm:$0xf]  ;;  %v711_v1 = vld [vmem:[%s229_s30 + $0x4] sm:$0xf]  ;;  %s750_s30 = scalar_lea.sflag [#allocation3], %s218_s18  ;;  %s626_s15 = smov [#allocation2]  }
  0x1b   : > { %v247_v2 = vsel %vm246_vm0, %v709_v0, 0.0  ;;  %v253_v3 = vmul.f32 %v709_v0, %v709_v0  ;;  %v254_v4 = vmul.f32 %v711_v1, %v711_v1  ;;  %v250_v6 = vsel %vm246_vm0, %v711_v1, 0.0  ;;  %s549_s5 = sshll.u32 %s626_s15, 4  ;;  %s550_s5 = int_to_ptr.vmem [resolvable:$false] %s549_s5 }
  0x1c   : > { %248 = vadd.xlane.f32.xlu0 %v247_v2  ;;  %s551_s6 = scalar_lea.vmem %s550_s5, 256  ;;  %p552_p1 = scmp.lt.s32.totalorder %s743_s23, %s550_s5 }
  0x1d   : > { %v255_v5 = vsel %vm246_vm0, %v253_v3, 0.0  ;;  %v258_v7 = vsel %vm246_vm0, %v254_v4, 0.0  ;;  %p553_p2 = scmp.lt.s32.totalorder %s551_s6, %s545_s4 }
  0x1e   : > { %256 = vadd.xlane.f32.xlu1 %v255_v5 }
  0x1f   : > { %p554_p3 = por %p553_p2, %p552_p1 }
  0x20   : > { %251 = vadd.xlane.f32.xlu0 %v250_v6 }
  0x21   : > { %p555_p5 = pnand %p554_p3, %p548_p0 }
  0x22   : > { %259 = vadd.xlane.f32.xlu1 %v258_v7 }
  0xa9   : > { %v249_v9 = vpop.xlane.xlu0 %248 }
  0xaa   : > { %v261_v10 = vsel %vm246_vm0, %v249_v9, 0.0 }
  0xab   : > { %v262_v11 = vrot.slane %v261_v10, 4  ;;  %v257_v12 = vpop.xlane.xlu1 %256 }
  0xac   : > { %v275_v13 = vsel %vm246_vm0, %v257_v12, 0.0 }
  0xad   : > { %v263_v14 = vadd.f32 %v262_v11, %v261_v10  ;;  %v276_v15 = vrot.slane %v275_v13, 4  ;;  %v252_v16 = vpop.xlane.xlu0 %251 }
  0xae   : > { %v268_v17 = vsel %vm246_vm0, %v252_v16, 0.0 }
  0xaf   : > { %v264_v18 = vrot.slane %v263_v14, 2  ;;  %v277_v19 = vadd.f32 %v276_v15, %v275_v13  ;;  %v269_v20 = vrot.slane %v268_v17, 4  ;;  %v260_v21 = vpop.xlane.xlu1 %259 }
  0xb0   : > { %v282_v22 = vsel %vm246_vm0, %v260_v21, 0.0 }
  0xb1   : > { %v265_v23 = vadd.f32 %v264_v18, %v263_v14  ;;  %v278_v24 = vrot.slane %v277_v19, 2  ;;  %v270_v25 = vadd.f32 %v269_v20, %v268_v17  ;;  %v283_v26 = vrot.slane %v282_v22, 4 }
  0xb3   : > { %v266_v27 = vrot.slane %v265_v23, 1  ;;  %v279_v28 = vadd.f32 %v278_v24, %v277_v19  ;;  %v271_v29 = vrot.slane %v270_v25, 2  ;;  %v284_v30 = vadd.f32 %v283_v26, %v282_v22 }
  0xb5   : > { %v267_v31 = vadd.f32 %v266_v27, %v265_v23  ;;  %v280_v32 = vrot.slane %v279_v28, 1  ;;  %v272_v33 = vadd.f32 %v271_v29, %v270_v25  ;;  %v285_v34 = vrot.slane %v284_v30, 2 }
  0xb7   : > { %v289_v35 = vmul.f32 0.001953125, %v267_v31  ;;  %v273_v36 = vrot.slane %v272_v33, 1  ;;  %v286_v37 = vadd.f32 %v285_v34, %v284_v30  ;;  %v281_v39 = vadd.f32 %v280_v32, %v279_v28 }
  0xb9   : > { %v291_v38 = vmul.f32 %v289_v35, %v267_v31  ;;  %v274_v40 = vadd.f32 %v273_v36, %v272_v33  ;;  %v287_v41 = vrot.slane %v286_v37, 1 }
  0xbb   : > { %v293_v42 = vsub.f32 %v281_v39, %v291_v38  ;;  %v290_v43 = vmul.f32 0.001953125, %v274_v40  ;;  %v288_v46 = vadd.f32 %v287_v41, %v286_v37 }
  0xbd   : > { %v295_v44 = vmax.f32 %v293_v42, 0.0  ;;  %v292_v45 = vmul.f32 %v290_v43, %v274_v40 }
  0xbf   : > { %v297_v47 = vmul.f32 0.0019569471, %v295_v44  ;;  %v294_v48 = vsub.f32 %v288_v46, %v292_v45 }
  0xc1   : > { %v299_v49 = vadd.f32 1e-05, %v297_v47  ;;  %v296_v50 = vmax.f32 %v294_v48, 0.0 }
  0xc3   : > { %541 = vrsqrt.f32 %v299_v49  ;;  %v298_v51 = vmul.f32 0.0019569471, %v296_v50 }
  0xc5   : > { %v300_v52 = vadd.f32 1e-05, %v298_v51 }
  0xc7   : > { %543 = vrsqrt.f32 %v300_v52 }
  0xcd   : > { %v542_v54 = vpop.eup %541 }
  0xce   : > { %v307_v55 = vmul.f32 %v542_v54, %v303_v53 }
  0xd0   : > { %315 = vperm.xlu0 %539, %v307_v55   ;;  %v309_v59 = vmul.f32 %v307_v55, %v289_v35 }
  0xd1   : > { %v544_v57 = vpop.eup %543 }
  0xd2   : > { %v308_v58 = vmul.f32 %v544_v57, %v304_v56  ;;  %v311_v61 = vsub.f32 %v305_v60, %v309_v59 }
  0xd4   : > { %320 = vperm.xlu1 %540, %v308_v58   ;;  %v310_v62 = vmul.f32 %v308_v58, %v290_v43 }
  0xd6   : > { %v312_v2 = vsub.f32 %v306_v63, %v310_v62 }
  0xd8   : > { %327 = vperm.xlu1 %540, %v311_v61  }
  0xdc   : > { %332 = vperm.xlu1 %540, %v312_v2  }
 0x14f   : > { %v316_v3 = vpop.permute.xlu0 %315 }
 0x150   : > { %v323_v5 = vmul.f32 %v316_v3, %v709_v0 }
 0x153   : > { %v321_v4 = vpop.permute.xlu1 %320 }
 0x154   : > { %v324_v8 = vmul.f32 %v321_v4, %v711_v1 }
 0x157   : > { %v328_v6 = vpop.permute.xlu1 %327 }
 0x158   : > { %v335_v7 = vadd.f32 %v328_v6, %v323_v5 }
 0x15a   : > { %337 = vst [vmem:[%s220_s21] sm:$0xf] %v335_v7 }
 0x15b   : > { %v333_v9 = vpop.permute.xlu1 %332 }
 0x15c   : > { %v336_v0 = vadd.f32 %v333_v9, %v324_v8 }
 0x15e   : > { %338 = vst [vmem:[%s220_s21 + $0x4] sm:$0xf] %v336_v0 }
 0x15f   : > { %558 = shalt.err (!%p555_p5)
}
 0x160   : > { %s559_s7 = scalar_lea.hbm %s748_s29, 128  ;;  %s563_s10 = scalar_lea.hbm %s799_s3, 256 }
 0x161   : > { %p560_p6 = scmp.ne.s32.totalorder %s748_s29, %s559_s7  ;;  %p564_p10 = scmp.lt.u32.totalorder %s748_s29, %s799_s3 }
 0x162   : > { %p565_p11 = scmp.lt.u32.totalorder %s563_s10, %s559_s7  ;;  %p567_p13 = scmp.lt.u32.totalorder %s559_s7, %s748_s29 }
 0x163   : > { %p561_p7 = pnand %p560_p6, %p689_p4 }
 0x164   : > { %p566_p12 = por %p565_p11, %p564_p10 }
 0x165   : > { %p562_p9 = pneg %p561_p7 }
 0x166   : > { %p568_p0 = por %p567_p13, %p566_p12 }
 0x168   : > { %p569_p1 = pnand %p568_p0, %p562_p9 }
 0x16a   : > { %572 = shalt.err (!%p569_p1)
}
 0x16b   : > { %s627_s19 = smov 64   ;;  %s628_s21 = smov 4  }
 0x16c   : > { %481 = dma.vmem_to_hbm [thread:$0]  (%p689_p4), %s743_s23, 128, %s748_s29, %s750_s30, %s627_s19, %s627_s19, %s628_s21  }
 0x16d PF: > { %p487_p2 = scmp.ge.s32.totalorder %s623_s17, 2  ;;  %s370_s26 = sand.u32 1, %s603_s12  }
 0x16e   : > { %s371_s27 = scalar_lea.sflag [#allocation3], %s370_s26 }
 0x16f   : > { %p484_p3 = pnand %p487_p2, %p696_p8 }
 0x171   : > { %598 = dma.done.wait (!%p484_p3), %s371_s27, 128  }
 0x172   : > { %600 = vsyncadd (!%p484_p3), %s371_s27, 4294967168  ;;  %s16_s17 = sadd.s32 1, %s623_s17   ;;  %s802_s12 = smov %s607_s13 }
 0x173   : > { %p13_p5 = scmp.ge.s32.totalorder %s16_s17, 4   ;;  %s803_s13 = smov %s611_s14 }
 0x174   : > { %s804_s14 = smov %s702_s25  ;;  %s805_s15 = smov %s619_s16 }
 0x175   : > { %s806_s16 = smov %s808_s20  ;;  %15 = sbr.rel (!%p13_p5) target bundleno = 4 (0x4), region = 73 }
 0x17c   :  { %376 = vsyncpa [#allocation3], 1 }
 0x17d   :  { %378 = vsyncpa [#allocation3 + $0x1], 1 }

</bundles_post_ra>
